<compile_context>
chip_gen: v7x
topology: tpu7x:2x2x1
jax: 0.10.0
libtpu: 0.0.40
codegen_flags: <defaults>
</compile_context>

<pallas_src>
import jax
import jax.numpy as jnp
from jax.experimental import pallas as pl
from jax.experimental.pallas import tpu as pltpu


def _mlp_kernel(xT_ref, w1_ref, b1_ref, w2_ref, b2_ref, o_ref):
    """Fused 2-layer MLP on one batch tile (transposed layout).

    xT_ref : (D, TB)  input tile, batch on lanes (lane-dense)
    w1_ref : (H, D)   hidden weight, original PyTorch (out, in) layout
    b1_ref : (H, 1)   hidden bias column (broadcast over lanes)
    w2_ref : (H, 1)   output weight column
    b2_ref : (1,)     output bias scalar, SMEM
    o_ref  : (1, TB)  output row, batch on lanes (lane-dense store)
    """
    # hidden^T = sigmoid(W1 @ x^T + b1)  : (H, TB)   -- single MXU matmul
    h = jnp.dot(w1_ref[...], xT_ref[...], preferred_element_type=jnp.float32)
    h = jax.nn.sigmoid(h + b1_ref[...])
    # Output layer (N=1): avoid a 1-wide MXU matmul; VPU mul + sublane reduce.
    y = jnp.sum(h * w2_ref[...], axis=0, keepdims=True)      # (1, TB)
    y = y + b2_ref[0]                                         # SMEM scalar
    o_ref[...] = jax.nn.sigmoid(y).astype(o_ref.dtype)


def _pick_batch_tile(B):
    """Largest tile that keeps the lane axis either full-B or a 128-multiple."""
    for tb in (1024, 512, 256, 128):
        if B % tb == 0:
            return tb
    return B  # small/odd batch: single block covering the whole batch


def prepare_params(w1, b1, w2, b2):
    """One-time glue from PyTorch nn.Linear layout to kernel layout.

    w1: (H, D), b1: (H,), w2: (1, H), b2: (1,)   with H = 2*D.
    """
    H = w1.shape[0]
    return (
        jnp.asarray(w1, jnp.float32),                   # (H, D) -- no transpose
        jnp.asarray(b1, jnp.float32).reshape(H, 1),     # bias column
        jnp.asarray(w2, jnp.float32).reshape(H, 1),     # weight column
        jnp.asarray(b2, jnp.float32).reshape(1),        # scalar for SMEM
    )


@jax.jit
def classification_forward(x, params):
    """x: (B, D) float32; params from prepare_params(). Returns (B, 1) float32."""
    w1, b1_col, w2_col, b2 = params
    B, D = x.shape
    H = w1.shape[0]
    TB = _pick_batch_tile(B)
    grid = (B // TB,)

    xT = x.T  # (D, B): batch on the lane axis (fuses into the jitted graph)

    out_row = pl.pallas_call(
        _mlp_kernel,
        out_shape=jax.ShapeDtypeStruct((1, B), jnp.float32),
        grid=grid,
        in_specs=[
            pl.BlockSpec((D, TB), lambda i: (0, i)),   # x^T tile, pipelined over batch
            pl.BlockSpec((H, D), lambda i: (0, 0)),    # W1 (resident across grid)
            pl.BlockSpec((H, 1), lambda i: (0, 0)),    # b1 column
            pl.BlockSpec((H, 1), lambda i: (0, 0)),    # w2 column
            pl.BlockSpec(memory_space=pltpu.MemorySpace.SMEM),  # b2 scalar
        ],
        out_specs=pl.BlockSpec((1, TB), lambda i: (0, i)),
        compiler_params=pltpu.CompilerParams(
            dimension_semantics=("parallel",),         # batch axis shards across cores
        ),
    )(xT, w1, b1_col, w2_col, b2)

    return out_row.T  # (B, 1), matching the PyTorch module's output shape


if __name__ == "__main__":
    key = jax.random.PRNGKey(0)
    kx, kp = jax.random.split(key)

    batch = 8
    input_dim = 19            # num_of_components = 19 in the source script
    hidden = 2 * input_dim

    x = jax.random.normal(kx, (batch, input_dim), dtype=jnp.float32)

    # PyTorch-style (uniform +/- 1/sqrt(fan_in)) init.
    k1, k2, k3, k4 = jax.random.split(kp, 4)
    bound1 = 1.0 / jnp.sqrt(jnp.float32(input_dim))
    bound2 = 1.0 / jnp.sqrt(jnp.float32(hidden))
    w1 = jax.random.uniform(k1, (hidden, input_dim), jnp.float32, -bound1, bound1)
    b1 = jax.random.uniform(k2, (hidden,), jnp.float32, -bound1, bound1)
    w2 = jax.random.uniform(k3, (1, hidden), jnp.float32, -bound2, bound2)
    b2 = jax.random.uniform(k4, (1,), jnp.float32, -bound2, bound2)

    params = prepare_params(w1, b1, w2, b2)
    out = classification_forward(x, params)
    out = jax.block_until_ready(out)

    # Reference check in plain JAX (same math, no Pallas).
    ref = jax.nn.sigmoid(jax.nn.sigmoid(x @ w1.T + b1) @ w2.T + b2)
    assert out.shape == (batch, 1), out.shape
    assert jnp.allclose(out, ref, atol=1e-5, rtol=1e-5)

    print("KERNEL_OK")
</pallas_src>

<mosaic_0001>
module attributes {stable_mosaic.version = 11 : i64} {
  func.func @_mlp_kernel(%arg0: i32, %arg1: memref<19x8xf32, #tpu.memory_space<vmem>>, %arg2: memref<38x19xf32, #tpu.memory_space<vmem>>, %arg3: memref<38x1xf32, #tpu.memory_space<vmem>>, %arg4: memref<38x1xf32, #tpu.memory_space<vmem>>, %arg5: memref<1xf32, #tpu.memory_space<smem>>, %arg6: memref<1x8xf32, #tpu.memory_space<vmem>>) attributes {dimension_semantics = [#tpu.dimension_semantics<parallel>], iteration_bounds = array<i64: 1>, scalar_prefetch = 0 : i64, scratch_operands = 0 : i64, tpu.core_type = #tpu.core_type<tc>, window_params = [{transform_indices = @transform_0, window_bounds = array<i64: 19, 8>}, {pipeline_mode = #tpu.pipeline_mode<synchronous>, transform_indices = @transform_1, window_bounds = array<i64: 38, 19>}, {pipeline_mode = #tpu.pipeline_mode<synchronous>, transform_indices = @transform_2, window_bounds = array<i64: 38, 1>}, {pipeline_mode = #tpu.pipeline_mode<synchronous>, transform_indices = @transform_3, window_bounds = array<i64: 38, 1>}, {transform_indices = @transform_4, window_bounds = array<i64: 1>}, {transform_indices = @transform_5, window_bounds = array<i64: 1, 8>}]} {
    %c0 = arith.constant 0 : index
    %c0_0 = arith.constant 0 : index
    %0 = vector.load %arg2[%c0, %c0_0] : memref<38x19xf32, #tpu.memory_space<vmem>>, vector<38x19xf32>
    %c0_1 = arith.constant 0 : index
    %c0_2 = arith.constant 0 : index
    %1 = vector.load %arg1[%c0_1, %c0_2] : memref<19x8xf32, #tpu.memory_space<vmem>>, vector<19x8xf32>
    %cst = arith.constant dense<0.000000e+00> : vector<38x8xf32>
    %2 = tpu.matmul %0, %1, %cst {dimension_numbers = #tpu.dot_dimension_numbers<[1], [0], [0], [1], [0, 0, 1, 1], [], []>} : vector<38x19xf32>, vector<19x8xf32>, vector<38x8xf32> -> vector<38x8xf32>
    %c0_3 = arith.constant 0 : index
    %c0_4 = arith.constant 0 : index
    %3 = vector.load %arg3[%c0_3, %c0_4] : memref<38x1xf32, #tpu.memory_space<vmem>>, vector<38x1xf32>
    %4 = vector.broadcast %3 : vector<38x1xf32> to vector<38x8xf32>
    %5 = arith.addf %2, %4 : vector<38x8xf32>
    %6 = arith.negf %5 : vector<38x8xf32>
    %7 = math.exp %6 : vector<38x8xf32>
    %cst_5 = arith.constant 1.000000e+00 : f32
    %8 = vector.broadcast %cst_5 : f32 to vector<38x8xf32>
    %9 = arith.addf %8, %7 : vector<38x8xf32>
    %10 = arith.divf %8, %9 : vector<38x8xf32>
    %c0_6 = arith.constant 0 : index
    %c0_7 = arith.constant 0 : index
    %11 = vector.load %arg4[%c0_6, %c0_7] : memref<38x1xf32, #tpu.memory_space<vmem>>, vector<38x1xf32>
    %12 = vector.broadcast %11 : vector<38x1xf32> to vector<38x8xf32>
    %13 = arith.mulf %10, %12 : vector<38x8xf32>
    %cst_8 = arith.constant dense<0.000000e+00> : vector<8xf32>
    %14 = vector.multi_reduction <add>, %13, %cst_8 [0] : vector<38x8xf32> to vector<8xf32>
    %15 = vector.shape_cast %14 : vector<8xf32> to vector<1x8xf32>
    %c0_9 = arith.constant 0 : index
    %16 = memref.load %arg5[%c0_9] : memref<1xf32, #tpu.memory_space<smem>>
    %17 = vector.broadcast %16 : f32 to vector<1x8xf32>
    %18 = arith.addf %15, %17 : vector<1x8xf32>
    %19 = arith.negf %18 : vector<1x8xf32>
    %20 = math.exp %19 : vector<1x8xf32>
    %cst_10 = arith.constant 1.000000e+00 : f32
    %21 = vector.broadcast %cst_10 : f32 to vector<1x8xf32>
    %22 = arith.addf %21, %20 : vector<1x8xf32>
    %23 = arith.divf %21, %22 : vector<1x8xf32>
    %c0_11 = arith.constant 0 : index
    %c0_12 = arith.constant 0 : index
    %24 = vector.load %arg6[%c0_11, %c0_12] : memref<1x8xf32, #tpu.memory_space<vmem>>, vector<1x8xf32>
    tpu.vector_store %arg6[%c0_11, %c0_12], %23 {strides = array<i32>} : memref<1x8xf32, #tpu.memory_space<vmem>>, vector<1x8xf32>,
    return
  }
  func.func @transform_0(%arg0: i32) -> (i32, i32) {
    %c0_i32 = arith.constant 0 : i32
    %c0_i32_0 = arith.constant 0 : i32
    return %c0_i32, %arg0 : i32, i32
  }
  func.func @transform_1(%arg0: i32) -> (i32, i32) {
    %c0_i32 = arith.constant 0 : i32
    %c0_i32_0 = arith.constant 0 : i32
    %c0_i32_1 = arith.constant 0 : i32
    return %c0_i32, %c0_i32_0 : i32, i32
  }
  func.func @transform_2(%arg0: i32) -> (i32, i32) {
    %c0_i32 = arith.constant 0 : i32
    %c0_i32_0 = arith.constant 0 : i32
    %c0_i32_1 = arith.constant 0 : i32
    return %c0_i32, %c0_i32_0 : i32, i32
  }
  func.func @transform_3(%arg0: i32) -> (i32, i32) {
    %c0_i32 = arith.constant 0 : i32
    %c0_i32_0 = arith.constant 0 : i32
    %c0_i32_1 = arith.constant 0 : i32
    return %c0_i32, %c0_i32_0 : i32, i32
  }
  func.func @transform_4(%arg0: i32) -> i32 {
    %c0_i32 = arith.constant 0 : i32
    %c0_i32_0 = arith.constant 0 : i32
    return %c0_i32 : i32
  }
  func.func @transform_5(%arg0: i32) -> (i32, i32) {
    %c0_i32 = arith.constant 0 : i32
    %c0_i32_0 = arith.constant 0 : i32
    return %c0_i32, %arg0 : i32, i32
  }
}

</mosaic_0001>

<bundles_post_ra>
// kernel: classification_forward.1
= control target key start
LH: loop header
LB: loop body
LE: loop exit
PB: predicated region body
PF: predicated region fallthrough
CT: control target
= control target key end

     0   :  { %v380_v2 = vmov 0.0|0.0   ;;  %vm381_vm0 = vmmov 0   ;;  %v382_v4 = vmov 0.0   ;;  %vm76_vm1 = vcmask 1042432   ;;  %s498_s0 = inlined_call_operand.vmem [shape: f32[19,8], index: 0, kind: input, shape index: {}]   ;;  %s499_s1 = inlined_call_operand.vmem [shape: f32[38,19], index: 1, kind: input, shape index: {}]   ;;  %s500_s2 = inlined_call_operand.vmem [shape: f32[38,1], index: 2, kind: input, shape index: {}]   ;;  %s501_s3 = inlined_call_operand.vmem [shape: f32[38,1], index: 3, kind: input, shape index: {}]   ;;  %s502_s4 = inlined_call_operand.<no memory space> [shape: f32[1], index: 4, kind: input, shape index: {}]   ;;  %s503_s5 = inlined_call_operand.hbm [shape: f32[1,8], index: 5, kind: output, shape index: {}]  }
   0x1   :  { %v27_v0 = vld [vmem:[%s498_s0] sm:$0xff]  ;;  %v28_v1 = vld [vmem:[%s498_s0 + $0x8] sm:$0xff]  ;;  %318 = vmatprep.subr.bf16.mxu0 %v380_v2  ;;  %321 = vmatprep.subr.bf16.mxu1 %v380_v2  ;;  %v32_v6 = vld [vmem:[%s500_s2 + $0x10] sm:$0xff]  ;;  %vm60_vm2 = vcmask 154624   ;;  %v383_v10 = vmov 0  }
   0x2   :  { %v319_v3 = vpack.c.bf16 %v28_v1, %v27_v0  ;;  %303 = vmatprep.mubr.msk.f32.mxu0 %vm381_vm0, %v382_v4  ;;  %312 = vmatprep.mubr.msk.f32.mxu1 %vm381_vm0, %v382_v4  ;;  %v30_v5 = vld [vmem:[%s500_s2] sm:$0xff]  ;;  %v29_v7 = vld [vmem:[%s498_s0 + $0x10] sm:$0x7]  ;;  %v25_v9 = vld [vmem:[%s499_s1 + $0x18] sm:$0xff] }
   0x3   :  { %v22_v8 = vld [vmem:[%s499_s1] sm:$0xff]  ;;  %330 = vset.pattern.permute.xlu0 %v383_v10  ;;  %331 = vset.pattern.permute.xlu1 %v383_v10 }
   0x4   :  { %320 = vmatpush3.bf16.msra.mxu0 %v319_v3  ;;  %323 = vmatpush3.bf16.msra.mxu1 %v319_v3 }
   0x5   :  { %301 = vmatprep.subr.mxu0 %v382_v4  ;;  %322 = vmatprep.subr.mxu1 %v382_v4 }
   0x6   :  { %37 = vperm.xlu0 %330, %v30_v5   ;;  %47 = vperm.xlu1 %331, %v32_v6  }
   0x7   :  { %11 = vsyncpa [#allocation4], 0  ;;  %v31_v11 = vld [vmem:[%s500_s2 + $0x8] sm:$0xff]  ;;  %v33_v12 = vld [vmem:[%s500_s2 + $0x18] sm:$0xff]  ;;  %vm235_vm3 = vcmask 64512   ;;  %vm243_vm4 = vcmask 62464  }
   0x8   :  { %302 = vmatpush3.msk.msra.mxu0 %vm76_vm1, %v29_v7  ;;  %324 = vmatpush3.msk.msra.mxu1 %vm76_vm1, %v29_v7  ;;  %v23_v13 = vld [vmem:[%s499_s1 + $0x8] sm:$0xff]  ;;  %v26_v14 = vld [vmem:[%s499_s1 + $0x20] sm:$0x3f]  ;;  %v24_v17 = vld [vmem:[%s499_s1 + $0x10] sm:$0xff]  ;;  %s384_s27 = smov [#allocation3]   ;;  %vm261_vm5 = vcmask 57344  }
   0x9   :  { %304 = vmatmul.mubr.msk.f32.vlgmr.msra.gmra.mrb[0].mxu0 %vm60_vm2, %v22_v8  ;;  %313 = vmatmul.mubr.msk.f32.vlgmr.msra.gmra.mrb[0].mxu1 %vm60_vm2, %v25_v9  ;;  %v34_v15 = vld [vmem:[%s500_s2 + $0x20] sm:$0x3f]  ;;  %v201_v18 = vld [vmem:[%s501_s3 + $0x8] sm:$0xff]  ;;  %v202_v19 = vld [vmem:[%s501_s3 + $0x10] sm:$0xff]  ;;  %s269_s28 = sshll.u32 %s384_s27, 4  ;;  %s270_s28 = int_to_ptr.vmem [resolvable:$true] %s269_s28 }
   0xa   :  { %306 = vmatprep.mubr.msk.f32.mxu0 %vm381_vm0, %v382_v4  ;;  %315 = vmatprep.mubr.msk.f32.mxu1 %vm381_vm0, %v382_v4  ;;  %v200_v16 = vld [vmem:[%s501_s3] sm:$0xff]  ;;  %v203_v20 = vld [vmem:[%s501_s3 + $0x18] sm:$0xff]  ;;  %s356_s29 = scalar_lea.vmem %s270_s28, 16  ;;  %s360_s30 = scalar_lea.vmem %s270_s28, 32 }
   0xb   :  { %42 = vperm.xlu0 %330, %v31_v11   ;;  %52 = vperm.xlu1 %331, %v33_v12   ;;  %v204_v21 = vld [vmem:[%s501_s3 + $0x20] sm:$0x3f]  ;;  %p357_p0 = scmp.ne.s32.totalorder %s270_s28, %s356_s29  ;;  %p361_p1 = scmp.lt.s32.totalorder %s270_s28, %s270_s28 }
   0xc   :  { %p362_p2 = scmp.lt.s32.totalorder %s360_s30, %s356_s29 }
   0xd   :  { %307 = vmatmul.mubr.msk.f32.gmra.mrb[2].mxu0 %vm60_vm2, %v23_v13  ;;  %316 = vmatmul.mubr.msk.f32.gmra.mrb[2].mxu1 %vm60_vm2, %v26_v14 }
   0xe   :  { %309 = vmatprep.mubr.msk.f32.mxu0 %vm381_vm0, %v382_v4  ;;  %p363_p3 = por %p362_p2, %p361_p1 }
   0xf   :  { %57 = vperm.xlu0 %330, %v34_v15   ;;  %207 = vperm.xlu1 %331, %v200_v16  }
  0x10   :  { %p364_p4 = pnand %p363_p3, %p357_p0 }
  0x11   :  { %310 = vmatmul.mubr.msk.f32.gmra.mrb[4].mxu0 %vm60_vm2, %v24_v17 }
  0x13   :  { %212 = vperm.xlu0 %330, %v201_v18   ;;  %217 = vperm.xlu1 %331, %v202_v19  }
  0x17   :  { %222 = vperm.xlu0 %330, %v203_v20   ;;  %227 = vperm.xlu1 %331, %v204_v21  }
  0x85   :  { %v38_v22 = vpop.permute.xlu0 %37  ;;  %v48_v23 = vpop.permute.xlu1 %47 }
  0x8a   :  { %v43_v24 = vpop.permute.xlu0 %42  ;;  %v53_v25 = vpop.permute.xlu1 %52 }
  0x8e   :  { %v58_v32 = vpop.permute.xlu0 %57  ;;  %v208_v57 = vpop.permute.xlu1 %207 }
  0x92   :  { %v213_v59 = vpop.permute.xlu0 %212  ;;  %v218_v62 = vpop.permute.xlu1 %217 }
  0x96   :  { %v223_v5 = vpop.permute.xlu0 %222  ;;  %v228_v9 = vpop.permute.xlu1 %227 }
  0xdc   :  { %v146_v26 = vpop.f32.mrb[0].mxu0  ;;  %v161_v27 = vpop.f32.mrb[0].mxu1 }
  0xdd   :  { %v147_v28 = vadd.f32 %v146_v26, %v38_v22  ;;  %v162_v29 = vadd.f32 %v161_v27, %v53_v25  ;;  %v305_v30 = vpop.f32.mrb[1].mxu0  ;;  %v314_v31 = vpop.f32.mrb[1].mxu1  ;;  %v253_v22 = vstv %s502_s4 }
  0xdf   :  { %v283_v33 = vmul.f32 -1.442695, %v147_v28  ;;  %v286_v34 = vmul.f32 -1.442695, %v162_v29 }
  0xe0   :  { %v151_v35 = vpop.f32.mrb[2].mxu0  ;;  %v166_v36 = vpop.f32.mrb[2].mxu1 }
  0xe1   :  { %332 = vpow2.f32 %v283_v33  ;;  %v152_v37 = vadd.f32 %v151_v35, %v43_v24  ;;  %v167_v38 = vadd.f32 %v166_v36, %v58_v32  ;;  %v308_v39 = vpop.f32.mrb[3].mxu0  ;;  %v317_v40 = vpop.f32.mrb[3].mxu1 }
  0xe2   :  { %334 = vpow2.f32 %v286_v34 }
  0xe3   :  { %v284_v41 = vmul.f32 -1.442695, %v152_v37  ;;  %v287_v42 = vmul.f32 -1.442695, %v167_v38 }
  0xe4   :  { %v156_v43 = vpop.f32.mrb[4].mxu0 }
  0xe5   :  { %336 = vpow2.f32 %v284_v41  ;;  %v157_v44 = vadd.f32 %v156_v43, %v48_v23  ;;  %v311_v45 = vpop.f32.mrb[5].mxu0 }
  0xe6   :  { %338 = vpow2.f32 %v287_v42 }
  0xe7   :  { %v285_v46 = vmul.f32 -1.442695, %v157_v44 }
  0xe9   :  { %340 = vpow2.f32 %v285_v46 }
  0xeb   :  { %v333_v47 = vpop.eup %332 }
  0xec   :  { %v185_v48 = vadd.f32 1.0, %v333_v47  ;;  %v335_v49 = vpop.eup %334 }
  0xed   :  { %v188_v52 = vadd.f32 1.0, %v335_v49 }
  0xee   :  { %342 = vrcp.f32 %v185_v48 }
  0xef   :  { %v337_v50 = vpop.eup %336 }
  0xf0   :  { %v339_v51 = vpop.eup %338  ;;  %v186_v53 = vadd.f32 1.0, %v337_v50 }
  0xf1   :  { %v189_v54 = vadd.f32 1.0, %v339_v51 }
  0xf2   :  { %344 = vrcp.f32 %v186_v53 }
  0xf3   :  { %v341_v55 = vpop.eup %340  ;;  %346 = vrcp.f32 %v188_v52 }
  0xf4   :  { %v187_v56 = vadd.f32 1.0, %v341_v55  ;;  %348 = vrcp.f32 %v189_v54 }
  0xf6   :  { %350 = vrcp.f32 %v187_v56 }
  0xf8   :  { %v343_v58 = vpop.eup %342 }
  0xf9   :  { %v230_v60 = vmul.f32 %v343_v58, %v208_v57 }
  0xfb   :  { %v236_v2 = vsel %vm235_vm3, %v230_v60, 0.0 }
  0xfc   :  { %v345_v61 = vpop.eup %344 }
  0xfd   :  { %v231_v63 = vmul.f32 %v345_v61, %v213_v59  ;;  %v347_v0 = vpop.eup %346 }
  0xfe   :  { %v349_v1 = vpop.eup %348  ;;  %v233_v7 = vmul.f32 %v347_v0, %v223_v5 }
  0xff   :  { %v237_v3 = vsel %vm235_vm3, %v231_v63, 0.0  ;;  %v234_v10 = vmul.f32 %v349_v1, %v228_v9 }
 0x100   :  { %v351_v4 = vpop.eup %350  ;;  %v238_v6 = vadd.f32 %v237_v3, %v236_v2  ;;  %v241_v13 = vsel %vm235_vm3, %v233_v7, 0.0 }
 0x101   :  { %v232_v8 = vmul.f32 %v351_v4, %v218_v62  ;;  %v244_v15 = vsel %vm243_vm4, %v234_v10, 0.0 }
 0x103   :  { %v239_v11 = vsel %vm235_vm3, %v232_v8, 0.0 }
 0x104   :  { %v240_v12 = vadd.f32 %v239_v11, %v238_v6 }
 0x106   :  { %v242_v14 = vadd.f32 %v241_v13, %v240_v12 }
 0x108   :  { %v245_v16 = vadd.f32 %v244_v15, %v242_v14 }
 0x10a   :  { %v246_v17 = vrot.slane %v245_v16, 4 }
 0x10c   :  { %v247_v18 = vadd.f32 %v246_v17, %v245_v16 }
 0x10e   :  { %v248_v19 = vrot.slane %v247_v18, 2 }
 0x110   :  { %v249_v20 = vadd.f32 %v248_v19, %v247_v18 }
 0x112   :  { %v250_v21 = vrot.slane %v249_v20, 1 }
 0x114   :  { %v251_v23 = vadd.f32 %v250_v21, %v249_v20 }
 0x116   :  { %v254_v24 = vadd.f32 %v253_v22, %v251_v23 }
 0x118   :  { %v288_v25 = vmul.f32 -1.442695, %v254_v24 }
 0x11a   :  { %352 = vpow2.f32 %v288_v25 }
 0x124   :  { %v353_v26 = vpop.eup %352 }
 0x125   :  { %v258_v27 = vadd.f32 1.0, %v353_v26 }
 0x127   :  { %354 = vrcp.f32 %v258_v27 }
 0x131   :  { %v355_v28 = vpop.eup %354 }
 0x132   :  { %262 = vst.msk [vmem:[#allocation3] sm:$0x1] %vm261_vm5, %v355_v28 }
 0x133   :  { %367 = shalt.err (!%p364_p4)
}
 0x134   :  { %s368_s7 = scalar_lea.hbm %s503_s5, 16 }
 0x135   :  { %p369_p5 = scmp.ne.s32.totalorder %s503_s5, %s368_s7  ;;  %p372_p6 = scmp.lt.u32.totalorder %s368_s7, %s503_s5 }
 0x137   :  { %p374_p7 = pnand %p372_p6, %p369_p5 }
 0x139   :  { %377 = shalt.err (!%p374_p7)
}
 0x13a   :  { %272 = dma.vmem_to_hbm [thread:$0]  %s270_s28, 16, %s503_s5, [#allocation4]  }
 0x13b   :  { %378 = dma.done.wait [#allocation4], 16  }
 0x13c   :  { %379 = vsyncadd [#allocation4], 4294967280 }
 0x13d   :  { %276 = vsyncpa [#allocation4], 1 }

</bundles_post_ra>
